<compile_context>
chip_gen: v7x
topology: tpu7x:2x2x1
jax: 0.10.0
libtpu: 0.0.40
codegen_flags: <defaults>
</compile_context>

<pallas_src>
import jax
import jax.numpy as jnp
from jax.experimental import pallas as pl
from jax.experimental.pallas import tpu as pltpu


def audio_mlp_kernel(ids_ref, m1t_ref, b1_ref, wo_ref, bo_ref, out_ref):
    """One tile of rows, computed in transposed (feature-major) layout.

    ids_ref : (1, TILE_N) int32   token ids (tokens on the lane axis)
    m1t_ref : (H1, V)     bf16    (tanh(emb) @ W1^T)^T  (emb/tanh/Linear1 folded)
    b1_ref  : (H1, 1)     f32
    wo_ref  : (O, H1)     bf16    torch Linear weight (out, in) -- used untransposed
    bo_ref  : (O, 1)      f32
    out_ref : (O, TILE_N) f32     lane-dense output tile (transposed back outside)
    """
    vocab = m1t_ref.shape[1]
    tile_n = ids_ref.shape[1]

    ids = ids_ref[...]                                              # (1, TILE_N)
    # Transposed one-hot: vocab on sublanes, tokens on lanes. Exact in bf16.
    row = jax.lax.broadcasted_iota(jnp.int32, (vocab, tile_n), 0)   # (V, TILE_N)
    onehot_t = (row == ids).astype(jnp.bfloat16)                    # (V, TILE_N)

    # h^T = M1^T @ onehot^T : (H1, V) x (V, TILE_N) -> (H1, TILE_N), f32 accumulation.
    h = jnp.dot(m1t_ref[...], onehot_t, preferred_element_type=jnp.float32)
    h = jnp.tanh(h + b1_ref[...])                                   # f32 tanh (v5e-safe)

    # o^T = Wo @ h^T : (O, H1) x (H1, TILE_N) -> (O, TILE_N)
    o = jnp.dot(wo_ref[...], h.astype(jnp.bfloat16),
                preferred_element_type=jnp.float32)
    out_ref[...] = jax.nn.sigmoid(o + bo_ref[...])                  # f32 sigmoid


def audio_mlp_forward(input_doc, params, *, tile_n=256):
    """input_doc: (B, S) int32 ids -> (B, S, O); dim 0 squeezed iff B == 1."""
    assert tile_n % 128 == 0, "tile_n must be lane-aligned (multiple of 128)"
    B, S = input_doc.shape
    N = B * S
    V, H0 = params["emb"].shape
    H1 = params["w1"].shape[0]
    O = params["wo"].shape[0]

    # Fold Embedding -> tanh -> Linear1 into a single (V, H1) table (exact).
    m1 = jnp.tanh(params["emb"].astype(jnp.float32)) @ params["w1"].astype(jnp.float32).T
    m1t = m1.T.astype(jnp.bfloat16)                         # (H1, V)
    b1 = params["b1"].astype(jnp.float32).reshape(H1, 1)    # (H1, 1)
    wo = params["wo"].astype(jnp.bfloat16)                  # (O, H1) torch layout
    bo = params["bo"].astype(jnp.float32).reshape(O, 1)     # (O, 1)

    # Tokens on the lane axis, padded to a whole number of tiles (id 0 is valid;
    # the padded columns are sliced off below).
    n_tiles = pl.cdiv(N, tile_n)
    n_pad = n_tiles * tile_n
    ids = input_doc.reshape(1, N).astype(jnp.int32)
    if n_pad != N:
        ids = jnp.pad(ids, ((0, 0), (0, n_pad - N)))

    resident = lambda shape: pl.BlockSpec(shape, lambda i: (0, 0))  # stays VMEM-resident

    cost = pl.CostEstimate(
        flops=2 * n_pad * (V * H1 + H1 * O),
        transcendentals=n_pad * (H1 + O),
        bytes_accessed=4 * n_pad + 4 * O * n_pad + 2 * (H1 * V + O * H1) + 4 * (H1 + O),
    )

    out_t = pl.pallas_call(
        audio_mlp_kernel,
        out_shape=jax.ShapeDtypeStruct((O, n_pad), jnp.float32),
        grid=(n_tiles,),
        in_specs=[
            pl.BlockSpec((1, tile_n), lambda i: (0, i)),    # ids tile
            resident((H1, V)),
            resident((H1, 1)),
            resident((O, H1)),
            resident((O, 1)),
        ],
        out_specs=pl.BlockSpec((O, tile_n), lambda i: (0, i)),
        compiler_params=pltpu.CompilerParams(
            dimension_semantics=("parallel",),              # v7x: shard tiles over 2 TCs
        ),
        cost_estimate=cost,
    )(ids, m1t, b1, wo, bo)

    out = out_t[:, :N].T.reshape(B, S, O)
    # torch's .squeeze(0): only removes dim 0 if it equals 1.
    return out[0] if out.shape[0] == 1 else out


def ref_forward(input_doc, params):
    """Plain-JAX f32 reference mirroring the PyTorch forward."""
    h = jnp.tanh(params["emb"][input_doc])
    h = jnp.tanh(h @ params["w1"].T + params["b1"])
    o = h @ params["wo"].T + params["bo"]
    p = jax.nn.sigmoid(o)
    return p[0] if p.shape[0] == 1 else p


if __name__ == "__main__":
    # args equivalent: {'input_dim': 64, 'hidden_layers': [32, 32], 'output_dim': 4}
    VOCAB, H0, H1, OUT = 64, 32, 32, 4
    B, S = 2, 8

    key = jax.random.PRNGKey(0)
    k_emb, k_w1, k_b1, k_wo, k_bo, k_ids = jax.random.split(key, 6)

    params = {
        "emb": 0.1 * jax.random.normal(k_emb, (VOCAB, H0), jnp.float32),
        "w1": 0.1 * jax.random.normal(k_w1, (H1, H0), jnp.float32),   # torch Linear: (out, in)
        "b1": 0.1 * jax.random.normal(k_b1, (H1,), jnp.float32),
        "wo": 0.1 * jax.random.normal(k_wo, (OUT, H1), jnp.float32),
        "bo": 0.1 * jax.random.normal(k_bo, (OUT,), jnp.float32),
    }

    input_doc = jax.random.randint(k_ids, (B, S), 0, VOCAB, dtype=jnp.int32)

    out = jax.block_until_ready(audio_mlp_forward(input_doc, params))
    ref = jax.block_until_ready(ref_forward(input_doc, params))

    assert out.shape == ref.shape, (out.shape, ref.shape)
    # bf16 MXU operands with f32 accumulation -> loosened tolerance vs pure-f32 ref.
    assert jnp.allclose(out, ref, atol=3e-3, rtol=3e-3), float(jnp.max(jnp.abs(out - ref)))

    print("KERNEL_OK")
</pallas_src>

<mosaic_0001>
module attributes {stable_mosaic.version = 11 : i64} {
  func.func @audio_mlp_kernel(%arg0: i32, %arg1: memref<1x256xi32, #tpu.memory_space<vmem>>, %arg2: memref<32x64xbf16, #tpu.memory_space<vmem>>, %arg3: memref<32x1xf32, #tpu.memory_space<vmem>>, %arg4: memref<4x32xbf16, #tpu.memory_space<vmem>>, %arg5: memref<4x1xf32, #tpu.memory_space<vmem>>, %arg6: memref<4x256xf32, #tpu.memory_space<vmem>>) attributes {dimension_semantics = [#tpu.dimension_semantics<parallel>], iteration_bounds = array<i64: 1>, scalar_prefetch = 0 : i64, scratch_operands = 0 : i64, tpu.core_type = #tpu.core_type<tc>, window_params = [{transform_indices = @transform_0, window_bounds = array<i64: 1, 256>}, {pipeline_mode = #tpu.pipeline_mode<synchronous>, transform_indices = @transform_1, window_bounds = array<i64: 32, 64>}, {pipeline_mode = #tpu.pipeline_mode<synchronous>, transform_indices = @transform_2, window_bounds = array<i64: 32, 1>}, {pipeline_mode = #tpu.pipeline_mode<synchronous>, transform_indices = @transform_3, window_bounds = array<i64: 4, 32>}, {pipeline_mode = #tpu.pipeline_mode<synchronous>, transform_indices = @transform_4, window_bounds = array<i64: 4, 1>}, {transform_indices = @transform_5, window_bounds = array<i64: 4, 256>}]} {
    %c0 = arith.constant 0 : index
    %c0_0 = arith.constant 0 : index
    %0 = vector.load %arg1[%c0, %c0_0] : memref<1x256xi32, #tpu.memory_space<vmem>>, vector<1x256xi32>
    %1 = tpu.iota {dimensions = array<i32: 0>} : vector<64x256xi32>
    %2 = vector.broadcast %0 : vector<1x256xi32> to vector<64x256xi32>
    %3 = arith.cmpi eq, %1, %2 : vector<64x256xi32>
    %4 = arith.extui %3 : vector<64x256xi1> to vector<64x256xi32>
    %5 = arith.sitofp %4 : vector<64x256xi32> to vector<64x256xf32>
    %6 = arith.truncf %5 : vector<64x256xf32> to vector<64x256xbf16>
    %c0_1 = arith.constant 0 : index
    %c0_2 = arith.constant 0 : index
    %7 = vector.load %arg2[%c0_1, %c0_2] : memref<32x64xbf16, #tpu.memory_space<vmem>>, vector<32x64xbf16>
    %cst = arith.constant dense<0.000000e+00> : vector<32x256xf32>
    %8 = tpu.matmul %7, %6, %cst {dimension_numbers = #tpu.dot_dimension_numbers<[1], [0], [0], [1], [0, 0, 1, 1], [], []>} : vector<32x64xbf16>, vector<64x256xbf16>, vector<32x256xf32> -> vector<32x256xf32>
    %c0_3 = arith.constant 0 : index
    %c0_4 = arith.constant 0 : index
    %9 = vector.load %arg3[%c0_3, %c0_4] : memref<32x1xf32, #tpu.memory_space<vmem>>, vector<32x1xf32>
    %10 = vector.broadcast %9 : vector<32x1xf32> to vector<32x256xf32>
    %11 = arith.addf %8, %10 : vector<32x256xf32>
    %12 = math.tanh %11 : vector<32x256xf32>
    %c0_5 = arith.constant 0 : index
    %c0_6 = arith.constant 0 : index
    %13 = vector.load %arg4[%c0_5, %c0_6] : memref<4x32xbf16, #tpu.memory_space<vmem>>, vector<4x32xbf16>
    %14 = arith.truncf %12 : vector<32x256xf32> to vector<32x256xbf16>
    %cst_7 = arith.constant dense<0.000000e+00> : vector<4x256xf32>
    %15 = tpu.matmul %13, %14, %cst_7 {dimension_numbers = #tpu.dot_dimension_numbers<[1], [0], [0], [1], [0, 0, 1, 1], [], []>} : vector<4x32xbf16>, vector<32x256xbf16>, vector<4x256xf32> -> vector<4x256xf32>
    %c0_8 = arith.constant 0 : index
    %c0_9 = arith.constant 0 : index
    %16 = vector.load %arg5[%c0_8, %c0_9] : memref<4x1xf32, #tpu.memory_space<vmem>>, vector<4x1xf32>
    %17 = vector.broadcast %16 : vector<4x1xf32> to vector<4x256xf32>
    %18 = arith.addf %15, %17 : vector<4x256xf32>
    %19 = arith.negf %18 : vector<4x256xf32>
    %20 = math.exp %19 : vector<4x256xf32>
    %cst_10 = arith.constant 1.000000e+00 : f32
    %21 = vector.broadcast %cst_10 : f32 to vector<4x256xf32>
    %22 = arith.addf %21, %20 : vector<4x256xf32>
    %23 = arith.divf %21, %22 : vector<4x256xf32>
    %c0_11 = arith.constant 0 : index
    %c0_12 = arith.constant 0 : index
    %24 = vector.load %arg6[%c0_11, %c0_12] : memref<4x256xf32, #tpu.memory_space<vmem>>, vector<4x256xf32>
    tpu.vector_store %arg6[%c0_11, %c0_12], %23 {strides = array<i32>} : memref<4x256xf32, #tpu.memory_space<vmem>>, vector<4x256xf32>,
    return
  }
  func.func @transform_0(%arg0: i32) -> (i32, i32) {
    %c0_i32 = arith.constant 0 : i32
    %c0_i32_0 = arith.constant 0 : i32
    return %c0_i32, %arg0 : i32, i32
  }
  func.func @transform_1(%arg0: i32) -> (i32, i32) {
    %c0_i32 = arith.constant 0 : i32
    %c0_i32_0 = arith.constant 0 : i32
    %c0_i32_1 = arith.constant 0 : i32
    return %c0_i32, %c0_i32_0 : i32, i32
  }
  func.func @transform_2(%arg0: i32) -> (i32, i32) {
    %c0_i32 = arith.constant 0 : i32
    %c0_i32_0 = arith.constant 0 : i32
    %c0_i32_1 = arith.constant 0 : i32
    return %c0_i32, %c0_i32_0 : i32, i32
  }
  func.func @transform_3(%arg0: i32) -> (i32, i32) {
    %c0_i32 = arith.constant 0 : i32
    %c0_i32_0 = arith.constant 0 : i32
    %c0_i32_1 = arith.constant 0 : i32
    return %c0_i32, %c0_i32_0 : i32, i32
  }
  func.func @transform_4(%arg0: i32) -> (i32, i32) {
    %c0_i32 = arith.constant 0 : i32
    %c0_i32_0 = arith.constant 0 : i32
    %c0_i32_1 = arith.constant 0 : i32
    return %c0_i32, %c0_i32_0 : i32, i32
  }
  func.func @transform_5(%arg0: i32) -> (i32, i32) {
    %c0_i32 = arith.constant 0 : i32
    %c0_i32_0 = arith.constant 0 : i32
    return %c0_i32, %arg0 : i32, i32
  }
}

</mosaic_0001>

<bundles_post_ra>
// kernel: tpu_custom_call.1
= control target key start
LH: loop header
LB: loop body
LE: loop exit
PB: predicated region body
PF: predicated region fallthrough
CT: control target
= control target key end

     0   :  { %v23_v0 = vlaneseq  ;;  %v383_v1 = vmov 0   ;;  %s460_s0 = inlined_call_operand.vmem [shape: s32[1,256], index: 0, kind: input, shape index: {}]   ;;  %s461_s1 = inlined_call_operand.vmem [shape: bf16[32,64], index: 1, kind: input, shape index: {}]   ;;  %s462_s2 = inlined_call_operand.vmem [shape: f32[32,1], index: 2, kind: input, shape index: {}]   ;;  %s463_s3 = inlined_call_operand.vmem [shape: bf16[4,32], index: 3, kind: input, shape index: {}]   ;;  %s464_s4 = inlined_call_operand.vmem [shape: f32[4,1], index: 4, kind: input, shape index: {}]   ;;  %s465_s5 = inlined_call_operand.hbm [shape: f32[4,256], index: 5, kind: output, shape index: {}]  }
   0x1   :  { %173 = vmatprep.mubr.bf16.mxu0 %v383_v1  ;;  %331 = vset.pattern.permute.xlu0 %v383_v1  ;;  %v100_v3 = vld [vmem:[%s462_s2] sm:$0xff]  ;;  %v102_v5 = vld [vmem:[%s462_s2 + $0x10] sm:$0xff]  ;;  %v101_v9 = vld [vmem:[%s462_s2 + $0x8] sm:$0xff] }
   0x2   :  { %v24_v2 = vshrl.u32 %v23_v0, 7  ;;  %332 = vset.pattern.permute.xlu1 %v383_v1  ;;  %249 = vmatprep.mubr.bf16.mxu1 %v383_v1  ;;  %v22_v4 = vld [vmem:[%s460_s0] sm:$0x3]  ;;  %v103_v12 = vld [vmem:[%s462_s2 + $0x18] sm:$0xff] }
   0x3   :  { %106 = vperm.xlu0 %331, %v100_v3   ;;  %116 = vperm.xlu1 %332, %v102_v5  }
   0x4   :  { %v25_v6 = vadd.s32 8, %v24_v2  ;;  %v38_v7 = vsub.s32 1, %v24_v2  ;;  %v34_v8 = vsub.s32 0, %v24_v2  ;;  %v26_v10 = vadd.s32 16, %v24_v2 }
   0x5   :  { %v27_v11 = vadd.s32 24, %v24_v2 }
   0x6   :  { %10 = vsyncpa [#allocation3], 0  ;;  %v39_v13 = vrot.slane %v22_v4, %v38_v7  ;;  %v35_v14 = vrot.slane %v22_v4, %v34_v8  ;;  %v28_v15 = vadd.s32 32, %v24_v2  ;;  %v29_v16 = vadd.s32 40, %v24_v2  ;;  %v207_v17 = vld [vmem:[%s464_s4] sm:$0xf] }
   0x7   :  { %111 = vperm.xlu0 %331, %v101_v9   ;;  %121 = vperm.xlu1 %332, %v103_v12   ;;  %v384_v18 = vmov 1.0|1.0   ;;  %v30_v19 = vadd.s32 48, %v24_v2  ;;  %v31_v20 = vadd.s32 56, %v24_v2  ;;  %v333_v21 = vld [vmem:[%s461_s1] sm:$0xff]   ;;  %v334_v22 = vld [vmem:[%s461_s1 + $0x8] sm:$0xff]  }
   0x8   :  { %vm41_vm0 = vcmp.eq.s32.totalorder %v24_v2, %v39_v13  ;;  %vm43_vm1 = vcmp.eq.s32.totalorder %v25_v6, %v39_v13  ;;  %vm40_vm2 = vcmp.eq.s32.totalorder %v24_v2, %v35_v14  ;;  %vm42_vm3 = vcmp.eq.s32.totalorder %v25_v6, %v35_v14  ;;  %v202_v55 = vld [vmem:[%s463_s3] sm:$0x3]  ;;  %s385_s3 = smov [#allocation2]  }
   0x9   :  { %vm307_vm4 = vmpackc.low %vm43_vm1, %vm41_vm0  ;;  %vm45_vm5 = vcmp.eq.s32.totalorder %v26_v10, %v39_v13  ;;  %vm47_vm6 = vcmp.eq.s32.totalorder %v27_v11, %v39_v13  ;;  %vm44_vm7 = vcmp.eq.s32.totalorder %v26_v10, %v35_v14  ;;  %vm46_vm8 = vcmp.eq.s32.totalorder %v27_v11, %v35_v14  ;;  %s281_s7 = sshll.u32 %s385_s3, 4  ;;  %s282_s7 = int_to_ptr.vmem [resolvable:$true] %s281_s7 }
   0xa   :  { %308 = vmatprep.subr.msk.bf16.mxu0 %vm307_vm4, %v384_v18  ;;  %vm309_vm9 = vmpackc.low %vm42_vm3, %vm40_vm2  ;;  %vm49_vm10 = vcmp.eq.s32.totalorder %v28_v15, %v39_v13  ;;  %vm51_vm11 = vcmp.eq.s32.totalorder %v29_v16, %v39_v13  ;;  %vm48_vm15 = vcmp.eq.s32.totalorder %v28_v15, %v35_v14  ;;  %vm50_vm0 = vcmp.eq.s32.totalorder %v29_v16, %v35_v14  ;;  %s359_s8 = scalar_lea.vmem %s282_s7, 128  ;;  %p364_p1 = scmp.lt.s32.totalorder %s282_s7, %s282_s7 }
   0xb   :  { %310 = vmatpush1.bf16.msk.msra.mxu0 %vm309_vm9, %v384_v18  ;;  %vm311_vm12 = vmpackc.low %vm47_vm6, %vm45_vm5  ;;  %210 = vperm.xlu0 %331, %v207_v17   ;;  %vm53_vm1 = vcmp.eq.s32.totalorder %v30_v19, %v39_v13  ;;  %vm55_vm4 = vcmp.eq.s32.totalorder %v31_v20, %v39_v13  ;;  %vm52_vm9 = vcmp.eq.s32.totalorder %v30_v19, %v35_v14  ;;  %p360_p0 = scmp.ne.s32.totalorder %s282_s7, %s359_s8  ;;  %p365_p2 = scmp.lt.s32.totalorder %s359_s8, %s359_s8 }
   0xc   :  { %312 = vmatprep.subr.msk.bf16.mxu0 %vm311_vm12, %v384_v18  ;;  %vm313_vm13 = vmpackc.low %vm46_vm8, %vm44_vm7  ;;  %vm54_vm5 = vcmp.eq.s32.totalorder %v31_v20, %v35_v14  ;;  %vm134_vm7 = vcmask 523264   ;;  %vm213_vm8 = vcmask 261120  }
   0xd   :  { %vm315_vm14 = vmpackc.low %vm51_vm11, %vm49_vm10  ;;  %p366_p3 = por %p365_p2, %p364_p1 }
   0xe   :  { %vm317_vm2 = vmpackc.low %vm50_vm0, %vm48_vm15 }
   0xf   :  { %314 = vmatpush1.bf16.msk.msra.mxu0 %vm313_vm13, %v384_v18  ;;  %vm319_vm3 = vmpackc.low %vm55_vm4, %vm53_vm1  ;;  %p367_p4 = pnand %p366_p3, %p360_p0 }
  0x10   :  { %316 = vmatprep.subr.msk.bf16.mxu0 %vm315_vm14, %v384_v18  ;;  %vm321_vm6 = vmpackc.low %vm54_vm5, %vm52_vm9 }
  0x13   :  { %318 = vmatpush1.bf16.msk.msra.mxu0 %vm317_vm2, %v384_v18 }
  0x14   :  { %320 = vmatprep.subr.msk.bf16.mxu0 %vm319_vm3, %v384_v18 }
  0x17   :  { %322 = vmatpush1.bf16.msk.msra.mxu0 %vm321_vm6, %v384_v18 }
  0x1a   :  { %323 = vmatmul.mubr.msk.bf16.vlgmr.msra.gmra.mrb[0].mxu0 %vm134_vm7, %v333_v21 }
  0x1b   :  { %183 = vmatprep.mubr.bf16.mxu0 %v383_v1 }
  0x22   :  { %324 = vmatmul.mubr.msk.bf16.gmra.mrb[4].mxu0 %vm134_vm7, %v334_v22 }
  0x82   :  { %v107_v23 = vpop.permute.xlu0 %106  ;;  %v117_v32 = vpop.permute.xlu1 %116 }
  0x86   :  { %v112_v27 = vpop.permute.xlu0 %111  ;;  %v122_v37 = vpop.permute.xlu1 %121 }
  0x8a   :  { %v211_v56 = vpop.permute.xlu0 %210 }
  0xed   :  { %v175_v24 = vpop.f32.mrb[0].mxu0 }
  0xee   :  { %v176_v25 = vadd.f32 %v175_v24, %v107_v23  ;;  %v177_v26 = vpop.f32.mrb[1].mxu0 }
  0xef   :  { %v178_v28 = vadd.f32 %v177_v26, %v107_v23  ;;  %v179_v29 = vpop.f32.mrb[2].mxu0 }
  0xf0   :  { %335 = vtanh.f32 %v176_v25  ;;  %v180_v30 = vadd.f32 %v179_v29, %v112_v27  ;;  %v181_v31 = vpop.f32.mrb[3].mxu0 }
  0xf1   :  { %337 = vtanh.f32 %v178_v28  ;;  %v182_v33 = vadd.f32 %v181_v31, %v112_v27 }
  0xf2   :  { %339 = vtanh.f32 %v180_v30 }
  0xf3   :  { %341 = vtanh.f32 %v182_v33 }
  0xf5   :  { %v185_v34 = vpop.f32.mrb[4].mxu0 }
  0xf6   :  { %v186_v35 = vadd.f32 %v185_v34, %v117_v32  ;;  %v187_v36 = vpop.f32.mrb[5].mxu0 }
  0xf7   :  { %v188_v38 = vadd.f32 %v187_v36, %v117_v32  ;;  %v189_v39 = vpop.f32.mrb[6].mxu0 }
  0xf8   :  { %343 = vtanh.f32 %v186_v35  ;;  %v190_v40 = vadd.f32 %v189_v39, %v122_v37  ;;  %v191_v41 = vpop.f32.mrb[7].mxu0 }
  0xf9   :  { %345 = vtanh.f32 %v188_v38  ;;  %v192_v42 = vadd.f32 %v191_v41, %v122_v37 }
  0xfa   :  { %v336_v43 = vpop.eup %335  ;;  %347 = vtanh.f32 %v190_v40 }
  0xfb   :  { %v338_v44 = vpop.eup %337  ;;  %349 = vtanh.f32 %v192_v42 }
  0xfc   :  { %v340_v45 = vpop.eup %339 }
  0xfd   :  { %v342_v46 = vpop.eup %341  ;;  %v203_v47 = vpack.c.bf16 %v340_v45, %v336_v43 }
  0xfe   :  { %v204_v48 = vpack.c.bf16 %v342_v46, %v338_v44 }
 0x100   :  { %217 = vmatprep.subr.bf16.mxu1 %v204_v48 }
 0x101   :  { %218 = vmatpush1.bf16.msra.mxu1 %v203_v47 }
 0x102   :  { %v344_v49 = vpop.eup %343 }
 0x103   :  { %v346_v50 = vpop.eup %345 }
 0x104   :  { %v348_v51 = vpop.eup %347 }
 0x105   :  { %v350_v52 = vpop.eup %349  ;;  %v205_v53 = vpack.c.bf16 %v348_v51, %v344_v49 }
 0x106   :  { %v206_v54 = vpack.c.bf16 %v350_v52, %v346_v50 }
 0x108   :  { %219 = vmatprep.subr.bf16.mxu1 %v206_v54 }
 0x109   :  { %220 = vmatpush1.bf16.msra.mxu1 %v205_v53 }
 0x10c   :  { %325 = vmatmul.mubr.msk.bf16.vlgmr.msra.gmra.mrb[0].mxu1 %vm213_vm8, %v202_v55 }
 0x1df   :  { %v251_v57 = vpop.f32.mrb[0].mxu1 }
 0x1e0   :  { %v252_v58 = vadd.f32 %v251_v57, %v211_v56  ;;  %v253_v59 = vpop.f32.mrb[1].mxu1 }
 0x1e1   :  { %v254_v60 = vadd.f32 %v253_v59, %v211_v56  ;;  %v255_v61 = vpop.f32.mrb[2].mxu1 }
 0x1e2   :  { %v326_v62 = vmul.f32 -1.442695, %v252_v58  ;;  %v256_v63 = vpop.f32.mrb[3].mxu1 }
 0x1e3   :  { %v327_v0 = vmul.f32 -1.442695, %v254_v60 }
 0x1e4   :  { %351 = vpow2.f32 %v326_v62 }
 0x1e5   :  { %353 = vpow2.f32 %v327_v0 }
 0x1ee   :  { %v352_v1 = vpop.eup %351 }
 0x1ef   :  { %v354_v2 = vpop.eup %353  ;;  %v264_v3 = vadd.f32 1.0, %v352_v1 }
 0x1f0   :  { %v265_v4 = vadd.f32 1.0, %v354_v2 }
 0x1f1   :  { %355 = vrcp.f32 %v264_v3 }
 0x1f2   :  { %357 = vrcp.f32 %v265_v4 }
 0x1fb   :  { %v356_v5 = vpop.eup %355 }
 0x1fc   :  { %v358_v6 = vpop.eup %357 }
 0x1fd   :  { %v272_v7 = vcombine.low %v356_v5, %v358_v6 }
 0x1ff   :  { %274 = vst [vmem:[#allocation2] sm:$0xff] %v272_v7 }
 0x200   :  { %370 = shalt.err (!%p367_p4)
}
 0x201   :  { %s371_s11 = scalar_lea.hbm %s465_s5, 128 }
 0x202   :  { %p372_p5 = scmp.ne.s32.totalorder %s465_s5, %s371_s11  ;;  %p375_p6 = scmp.lt.u32.totalorder %s371_s11, %s465_s5 }
 0x204   :  { %p377_p7 = pnand %p375_p6, %p372_p5 }
 0x206   :  { %380 = shalt.err (!%p377_p7)
}
 0x207   :  { %284 = dma.vmem_to_hbm [thread:$0]  %s282_s7, 128, %s465_s5, [#allocation3]  }
 0x208   :  { %381 = dma.done.wait [#allocation3], 128  }
 0x209   :  { %382 = vsyncadd [#allocation3], 4294967168 }
 0x20a   :  { %288 = vsyncpa [#allocation3], 1 }

</bundles_post_ra>
